<compile_context>
chip_gen: v5e
topology: v5e:2x2
jax: 0.10.0
libtpu: 0.0.40
codegen_flags: <defaults>
</compile_context>

<pallas_src>
import functools

import jax
import jax.numpy as jnp
from jax.experimental import pallas as pl
from jax.experimental.pallas import tpu as pltpu


def _round_up(n, m):
    return ((n + m - 1) // m) * m


def _downscale_kernel(p_ref, w_ref, b_ref, a_ref, ia_ref, o_ref):
    """One row-tile: y = P @ W + b ; out = y + inv_alpha * sin(alpha*y)^2."""
    # MXU matmul: bf16 (or f32) inputs, f32 accumulation.
    y = jnp.dot(p_ref[...], w_ref[...], preferred_element_type=jnp.float32)
    y = y + b_ref[...]                      # (tm, Cp) + (1, Cp) broadcast
    # Snake activation, all in f32 (EUP sin, VPU mul/add; no divide).
    s = jnp.sin(a_ref[...] * y)
    o_ref[...] = (y + ia_ref[...] * (s * s)).astype(o_ref.dtype)


def downscale_pallas(x, weight, bias, alpha, *, kernel_size, stride,
                     tm=512, lane_pad=128, use_bf16=True,
                     vmem_budget_bytes=12 * 1024 * 1024):
    """Forward pass of DownScale.

    x:      (B, T, C_in)   float32 (or bfloat16)
    weight: (C_out, C_in, K)
    bias:   (C_out,)
    alpha:  (C_out,)   (Snake1d parameter; stored as (dim, 1) in torch)

    Returns (B, T_out, C_out) with T_out = (T_pad - K) // stride + 1.
    """
    B, T, C_in = x.shape
    C_out = weight.shape[0]
    K = kernel_size

    # _maybe_pad: pad end of the time axis so (T - K) % stride == 0.
    pad = (T - K) % stride
    if pad > 0:
        x = jnp.pad(x, ((0, 0), (0, pad), (0, 0)))
    T_pad = T + pad
    T_out = (T_pad - K) // stride + 1

    mm_dtype = jnp.bfloat16 if use_bf16 else x.dtype
    xc = x.astype(mm_dtype)

    # im2col (bf16): patches[b, t, k, ci] = x[b, t*stride + k, ci]
    cols = [xc[:, k:k + stride * (T_out - 1) + 1:stride, :] for k in range(K)]
    patches = jnp.stack(cols, axis=2).reshape(B * T_out, K * C_in)

    KC = K * C_in
    KC_pad = _round_up(KC, lane_pad)        # lane-aligned contraction dim
    C_out_pad = _round_up(C_out, lane_pad)  # lane-dense output dim

    # Row tile: large by default, shrunk (multiple of 8) for tiny problems,
    # and clamped so double-buffered tiles stay well inside VMEM.
    M = B * T_out
    out_itemsize = jnp.dtype(x.dtype).itemsize
    mm_itemsize = jnp.dtype(mm_dtype).itemsize
    w_bytes = 2 * KC_pad * C_out_pad * mm_itemsize
    per_row = 2 * (KC_pad * mm_itemsize + C_out_pad * out_itemsize)
    tm_cap = max(8, (vmem_budget_bytes - w_bytes) // max(per_row, 1))
    tm = min(tm, tm_cap)
    tm = _round_up(max(8, min(tm, _round_up(M, 8))), 8)
    M_pad = _round_up(M, tm)

    patches = jnp.pad(patches, ((0, M_pad - M), (0, KC_pad - KC)))

    # Flatten weight to (k outer, ci inner): W_flat[k*C_in + ci, co].
    w_flat = jnp.transpose(weight, (2, 1, 0)).reshape(KC, C_out)
    w_flat = jnp.pad(w_flat, ((0, KC_pad - KC), (0, C_out_pad - C_out)))
    w_flat = w_flat.astype(mm_dtype)

    bias_p = jnp.pad(bias.astype(jnp.float32),
                     (0, C_out_pad - C_out)).reshape(1, C_out_pad)
    # Pad alpha with 1.0 so padded columns stay finite (they are sliced off).
    alpha_p = jnp.pad(alpha.astype(jnp.float32), (0, C_out_pad - C_out),
                      constant_values=1.0).reshape(1, C_out_pad)
    inv_alpha_p = 1.0 / (alpha_p + 1e-9)

    out = pl.pallas_call(
        _downscale_kernel,
        out_shape=jax.ShapeDtypeStruct((M_pad, C_out_pad), x.dtype),
        grid_spec=pltpu.PrefetchScalarGridSpec(
            num_scalar_prefetch=0,
            grid=(M_pad // tm,),
            in_specs=[
                pl.BlockSpec((tm, KC_pad), lambda i: (i, 0)),        # patches
                pl.BlockSpec((KC_pad, C_out_pad), lambda i: (0, 0)), # weight
                pl.BlockSpec((1, C_out_pad), lambda i: (0, 0)),      # bias
                pl.BlockSpec((1, C_out_pad), lambda i: (0, 0)),      # alpha
                pl.BlockSpec((1, C_out_pad), lambda i: (0, 0)),      # 1/alpha
            ],
            out_specs=pl.BlockSpec((tm, C_out_pad), lambda i: (i, 0)),
        ),
        compiler_params=pltpu.CompilerParams(
            dimension_semantics=("parallel",)),
    )(patches, w_flat, bias_p, alpha_p, inv_alpha_p)

    out = out[:M, :C_out]
    return out.reshape(B, T_out, C_out)


def downscale_reference(x, weight, bias, alpha, *, kernel_size, stride):
    """Pure-JAX reference mirroring the PyTorch module (f32 path)."""
    K = kernel_size
    T = x.shape[1]
    pad = (T - K) % stride
    if pad > 0:
        x = jnp.pad(x, ((0, 0), (0, pad), (0, 0)))
    x_ncw = jnp.transpose(x, (0, 2, 1))                  # (B, C_in, T_pad)
    y = jax.lax.conv_general_dilated(
        x_ncw, weight, window_strides=(stride,), padding="VALID",
        dimension_numbers=("NCH", "OIH", "NCH"),
        precision=jax.lax.Precision.HIGHEST)
    y = y + bias[None, :, None]
    a = alpha[None, :, None]
    y = y + (1.0 / (a + 1e-9)) * jnp.sin(a * y) ** 2
    return jnp.transpose(y, (0, 2, 1))                   # (B, T_out, C_out)


if __name__ == "__main__":
    # Small shapes consistent with the module's forward:
    #   input (B, T, C_in) -> output (B, T_out, C_out).
    B, T, C_in, C_out = 2, 16, 32, 16
    kernel_size, stride = 3, 2

    key = jax.random.PRNGKey(0)
    kx, kw, kb, ka = jax.random.split(key, 4)
    x = jax.random.normal(kx, (B, T, C_in), dtype=jnp.float32)
    weight = jax.random.normal(kw, (C_out, C_in, kernel_size),
                               dtype=jnp.float32) * 0.1
    bias = jax.random.normal(kb, (C_out,), dtype=jnp.float32) * 0.1
    # Snake1d initializes alpha = ones(dim, 1); perturb slightly but keep
    # deterministic so the activation path is exercised non-trivially.
    alpha = 1.0 + 0.1 * jax.random.normal(ka, (C_out,), dtype=jnp.float32)

    fwd = jax.jit(functools.partial(
        downscale_pallas, kernel_size=kernel_size, stride=stride))
    out = fwd(x, weight, bias, alpha)
    jax.block_until_ready(out)

    ref = downscale_reference(x, weight, bias, alpha,
                              kernel_size=kernel_size, stride=stride)
    assert out.shape == ref.shape, (out.shape, ref.shape)
    # bf16 MXU inputs -> tolerance loosened accordingly (f32 accumulation,
    # f32 activation math keep the error well inside this bound).
    assert jnp.allclose(out, ref, atol=2e-2, rtol=2e-2), \
        float(jnp.max(jnp.abs(out - ref)))

    print("KERNEL_OK")
</pallas_src>

<mosaic_0001>
module attributes {stable_mosaic.version = 11 : i64} {
  func.func @_downscale_kernel(%arg0: i32, %arg1: memref<16x128xbf16, #tpu.memory_space<vmem>>, %arg2: memref<128x128xbf16, #tpu.memory_space<vmem>>, %arg3: memref<1x128xf32, #tpu.memory_space<vmem>>, %arg4: memref<1x128xf32, #tpu.memory_space<vmem>>, %arg5: memref<1x128xf32, #tpu.memory_space<vmem>>, %arg6: memref<16x128xf32, #tpu.memory_space<vmem>>) attributes {dimension_semantics = [#tpu.dimension_semantics<parallel>], iteration_bounds = array<i64: 1>, scalar_prefetch = 0 : i64, scratch_operands = 0 : i64, tpu.core_type = #tpu.core_type<tc>, window_params = [{transform_indices = @transform_0, window_bounds = array<i64: 16, 128>}, {pipeline_mode = #tpu.pipeline_mode<synchronous>, transform_indices = @transform_1, window_bounds = array<i64: 128, 128>}, {pipeline_mode = #tpu.pipeline_mode<synchronous>, transform_indices = @transform_2, window_bounds = array<i64: 1, 128>}, {pipeline_mode = #tpu.pipeline_mode<synchronous>, transform_indices = @transform_3, window_bounds = array<i64: 1, 128>}, {pipeline_mode = #tpu.pipeline_mode<synchronous>, transform_indices = @transform_4, window_bounds = array<i64: 1, 128>}, {transform_indices = @transform_5, window_bounds = array<i64: 16, 128>}]} {
    %c0 = arith.constant 0 : index
    %c0_0 = arith.constant 0 : index
    %0 = vector.load %arg1[%c0, %c0_0] : memref<16x128xbf16, #tpu.memory_space<vmem>>, vector<16x128xbf16>
    %c0_1 = arith.constant 0 : index
    %c0_2 = arith.constant 0 : index
    %1 = vector.load %arg2[%c0_1, %c0_2] : memref<128x128xbf16, #tpu.memory_space<vmem>>, vector<128x128xbf16>
    %cst = arith.constant dense<0.000000e+00> : vector<16x128xf32>
    %2 = tpu.matmul %0, %1, %cst {dimension_numbers = #tpu.dot_dimension_numbers<[1], [0], [0], [1], [0, 0, 1, 1], [], []>} : vector<16x128xbf16>, vector<128x128xbf16>, vector<16x128xf32> -> vector<16x128xf32>
    %c0_3 = arith.constant 0 : index
    %c0_4 = arith.constant 0 : index
    %3 = vector.load %arg3[%c0_3, %c0_4] : memref<1x128xf32, #tpu.memory_space<vmem>>, vector<1x128xf32>
    %4 = vector.broadcast %3 : vector<1x128xf32> to vector<16x128xf32>
    %5 = arith.addf %2, %4 : vector<16x128xf32>
    %c0_5 = arith.constant 0 : index
    %c0_6 = arith.constant 0 : index
    %6 = vector.load %arg4[%c0_5, %c0_6] : memref<1x128xf32, #tpu.memory_space<vmem>>, vector<1x128xf32>
    %7 = vector.broadcast %6 : vector<1x128xf32> to vector<16x128xf32>
    %8 = arith.mulf %7, %5 : vector<16x128xf32>
    %9 = math.sin %8 : vector<16x128xf32>
    %c0_7 = arith.constant 0 : index
    %c0_8 = arith.constant 0 : index
    %10 = vector.load %arg5[%c0_7, %c0_8] : memref<1x128xf32, #tpu.memory_space<vmem>>, vector<1x128xf32>
    %11 = arith.mulf %9, %9 : vector<16x128xf32>
    %12 = vector.broadcast %10 : vector<1x128xf32> to vector<16x128xf32>
    %13 = arith.mulf %12, %11 : vector<16x128xf32>
    %14 = arith.addf %5, %13 : vector<16x128xf32>
    %c0_9 = arith.constant 0 : index
    %c0_10 = arith.constant 0 : index
    %15 = vector.load %arg6[%c0_9, %c0_10] : memref<16x128xf32, #tpu.memory_space<vmem>>, vector<16x128xf32>
    tpu.vector_store %arg6[%c0_9, %c0_10], %14 {strides = array<i32>} : memref<16x128xf32, #tpu.memory_space<vmem>>, vector<16x128xf32>,
    return
  }
  func.func @transform_0(%arg0: i32) -> (i32, i32) {
    %c0_i32 = arith.constant 0 : i32
    %c0_i32_0 = arith.constant 0 : i32
    return %arg0, %c0_i32 : i32, i32
  }
  func.func @transform_1(%arg0: i32) -> (i32, i32) {
    %c0_i32 = arith.constant 0 : i32
    %c0_i32_0 = arith.constant 0 : i32
    %c0_i32_1 = arith.constant 0 : i32
    return %c0_i32, %c0_i32_0 : i32, i32
  }
  func.func @transform_2(%arg0: i32) -> (i32, i32) {
    %c0_i32 = arith.constant 0 : i32
    %c0_i32_0 = arith.constant 0 : i32
    %c0_i32_1 = arith.constant 0 : i32
    return %c0_i32, %c0_i32_0 : i32, i32
  }
  func.func @transform_3(%arg0: i32) -> (i32, i32) {
    %c0_i32 = arith.constant 0 : i32
    %c0_i32_0 = arith.constant 0 : i32
    %c0_i32_1 = arith.constant 0 : i32
    return %c0_i32, %c0_i32_0 : i32, i32
  }
  func.func @transform_4(%arg0: i32) -> (i32, i32) {
    %c0_i32 = arith.constant 0 : i32
    %c0_i32_0 = arith.constant 0 : i32
    %c0_i32_1 = arith.constant 0 : i32
    return %c0_i32, %c0_i32_0 : i32, i32
  }
  func.func @transform_5(%arg0: i32) -> (i32, i32) {
    %c0_i32 = arith.constant 0 : i32
    %c0_i32_0 = arith.constant 0 : i32
    return %arg0, %c0_i32 : i32, i32
  }
}

</mosaic_0001>

<bundles_post_ra>
// kernel: downscale_pallas.1
= control target key start
LH: loop header
LB: loop body
LE: loop exit
PB: predicated region body
PF: predicated region fallthrough
CT: control target
= control target key end

     0   :  { %v503_v34 = vmov 683565275   ;;  %v504_v36 = vmov 2475754826   ;;  %v505_v40 = vmov 2131351028   ;;  %s739_s1 = inlined_call_operand.vmem [shape: bf16[128,128], index: 1, kind: input, shape index: {}]   ;;  %s740_s2 = inlined_call_operand.vmem [shape: f32[1,128], index: 2, kind: input, shape index: {}]   ;;  %s741_s3 = inlined_call_operand.vmem [shape: f32[1,128], index: 3, kind: input, shape index: {}]   ;;  %s742_s4 = inlined_call_operand.vmem [shape: f32[1,128], index: 4, kind: input, shape index: {}]   ;;  %s743_s0 = inlined_call_operand.vmem [shape: bf16[16,128], index: 0, kind: input, shape index: {}]   ;;  %s744_s5 = inlined_call_operand.vmem [shape: f32[16,128], index: 5, kind: output, shape index: {}]  }
   0x1   :  { %v492_v0 = vld [vmem:[%s739_s1 + $0x38] sm:$0xff]  ;;  %v491_v1 = vld [vmem:[%s739_s1 + $0x30] sm:$0xff]  ;;  %v490_v2 = vld [vmem:[%s739_s1 + $0x28] sm:$0xff]  ;;  %v506_v43 = vmov 2102212464  }
   0x2   :  { %96 = vmatpush.bf16.msra.mxu0 %v492_v0  ;;  %v489_v3 = vld [vmem:[%s739_s1 + $0x20] sm:$0xff]  ;;  %v488_v4 = vld [vmem:[%s739_s1 + $0x18] sm:$0xff]  ;;  %v487_v5 = vld [vmem:[%s739_s1 + $0x10] sm:$0xff]  ;;  %v507_v46 = vmov 920167782  }
   0x3   :  { %v486_v6 = vld [vmem:[%s739_s1 + $0x8] sm:$0xff]  ;;  %v485_v7 = vld [vmem:[%s739_s1] sm:$0xff]  ;;  %v508_v49 = vmov 1326507024  }
   0x4   :  { %v484_v8 = vld [vmem:[%s743_s0] sm:$0xff] }
   0x5   :  { %v500_v9 = vld [vmem:[%s740_s2] ss:$0 sm:$0xff] }
   0x6   :  { %97 = vmatpush.bf16.msra.mxu0 %v491_v1  ;;  %v501_v10 = vld [vmem:[%s741_s3] ss:$0 sm:$0xff] }
   0xa   :  { %98 = vmatpush.bf16.msra.mxu0 %v490_v2 }
   0xe   :  { %99 = vmatpush.bf16.msra.mxu0 %v489_v3 }
  0x12   :  { %100 = vmatpush.bf16.msra.mxu0 %v488_v4 }
  0x16   :  { %101 = vmatpush.bf16.msra.mxu0 %v487_v5 }
  0x1a   :  { %102 = vmatpush.bf16.msra.mxu0 %v486_v6 }
  0x1e   :  { %103 = vmatpush.bf16.msra.mxu0 %v485_v7 }
  0x21   :  { %104 = vmatmul.bf16.vlgmr.msra.gmra.mxu0 %v484_v8 }
  0x9e   :  { %v105_v11 = vpop.f32.mrf.mxu0 }
  0x9f   :  { %v573_v12 = vadd.f32 %v500_v9, %v105_v11 }
  0xa1   :  { %v576_v13 = vmul.f32 %v501_v10, %v573_v12 }
  0xa3   :  { %v116_v14 = vand.u32 2147483647, %v576_v13  ;;  %v119_v15 = vand.u32 2139095040, %v576_v13 }
  0xa5   :  { %v120_v16 = vshrl.u32 %v119_v15, 23  ;;  %v123_v17 = vand.u32 8388607, %v116_v14 }
  0xa6   :  { %v107_v18 = vpop.f32.mrf.mxu0 }
  0xa7   :  { %v478_v19 = vadd.s32 4294967169, %v120_v16  ;;  %v124_v20 = vor.u32 8388608, %v123_v17  ;;  %v582_v21 = vadd.f32 %v500_v9, %v107_v18 }
  0xa9   :  { %v126_v22 = vadd.s32 1, %v478_v19  ;;  %v585_v23 = vmul.f32 %v501_v10, %v582_v21  ;;  %v587_v24 = vshll.u32 %v124_v20, 8 }
  0xab   :  { %vm127_vm0 = vcmp.gt.s32.totalorder %v126_v22, 0  ;;  %v271_v26 = vand.u32 2147483647, %v585_v23  ;;  %v274_v27 = vand.u32 2139095040, %v585_v23  ;;  %v165_v30 = vand.u32 65535, %v587_v24 }
  0xac   :  { %v128_v25 = vsel %vm127_vm0, %v126_v22, 0  ;;  %v166_v31 = vshrl.u32 %v587_v24, 16 }
  0xad   :  { %v130_v28 = vand.u32 31, %v128_v25  ;;  %v275_v32 = vshrl.u32 %v274_v27, 23  ;;  %v129_v33 = vshrl.u32 %v128_v25, 5  ;;  %v597_v38 = vand.u32 8388607, %v271_v26 }
  0xaf   :  { %v131_v29 = vsub.s32 32, %v130_v28  ;;  %v133_v35 = vshll.u32 %v503_v34, %v130_v28  ;;  %v136_v37 = vshll.u32 %v504_v36, %v130_v28  ;;  %v139_v42 = vshll.u32 %v505_v40, %v130_v28 }
  0xb0   :  { %v142_v45 = vshll.u32 %v506_v43, %v130_v28  ;;  %v145_v48 = vshll.u32 %v507_v46, %v130_v28  ;;  %v481_v54 = vadd.s32 4294967169, %v275_v32  ;;  %vm148_vm1 = vcmp.lt.s32.totalorder %v129_v33, 1 }
  0xb1   :  { %v134_v39 = vshrl.u32 %v504_v36, %v131_v29  ;;  %v137_v41 = vshrl.u32 %v505_v40, %v131_v29  ;;  %v140_v44 = vshrl.u32 %v506_v43, %v131_v29  ;;  %v143_v47 = vshrl.u32 %v507_v46, %v131_v29 }
  0xb2   :  { %v146_v50 = vshrl.u32 %v508_v49, %v131_v29  ;;  %vm151_vm2 = vcmp.lt.s32.totalorder %v129_v33, 4  ;;  %v132_v57 = vshrl.u32 %v503_v34, %v131_v29  ;;  %vm150_vm3 = vcmp.lt.s32.totalorder %v129_v33, 3 }
  0xb3   :  { %v135_v51 = vor.u32 %v134_v39, %v133_v35  ;;  %v138_v52 = vor.u32 %v137_v41, %v136_v37  ;;  %v141_v53 = vor.u32 %v140_v44, %v139_v42  ;;  %v144_v55 = vor.u32 %v143_v47, %v142_v45 }
  0xb4   :  { %v147_v56 = vor.u32 %v146_v50, %v145_v48  ;;  %v281_v63 = vadd.s32 1, %v481_v54  ;;  %vm149_vm4 = vcmp.lt.s32.totalorder %v129_v33, 2  ;;  %v279_v10 = vor.u32 8388608, %v597_v38 }
  0xb5   :  { %v153_v58 = vsel %vm151_vm2, %v141_v53, 2102212464  ;;  %v156_v59 = vsel %vm148_vm1, %v135_v51, %v138_v52  ;;  %v160_v60 = vsel %vm148_vm1, %v138_v52, %v141_v53  ;;  %v157_v61 = vsel %vm151_vm2, %v144_v55, 920167782 }
  0xb6   :  { %v161_v62 = vsel %vm151_vm2, %v147_v56, 1326507024  ;;  %v152_v0 = vsel %vm148_vm1, %v132_v57, %v135_v51  ;;  %v158_v1 = vsel %vm150_vm3, %v141_v53, %v157_v61  ;;  %v154_v3 = vsel %vm150_vm3, %v138_v52, %v153_v58 }
  0xb7   :  { %v162_v2 = vsel %vm150_vm3, %v144_v55, %v161_v62  ;;  %v159_v4 = vsel %vm149_vm4, %v156_v59, %v158_v1  ;;  %vm282_vm5 = vcmp.gt.s32.totalorder %v281_v63, 0  ;;  %v609_v11 = vsel %vm149_vm4, %v152_v0, %v154_v3 }
  0xb8   :  { %v163_v5 = vsel %vm149_vm4, %v160_v60, %v162_v2  ;;  %v189_v8 = vand.u32 65535, %v159_v4  ;;  %v190_v9 = vshrl.u32 %v159_v4, 16  ;;  %v283_v17 = vsel %vm282_vm5, %v281_v63, 0 }
  0xb9   :  { %v167_v6 = vand.u32 65535, %v163_v5  ;;  %v168_v7 = vshrl.u32 %v163_v5, 16  ;;  %v285_v41 = vand.u32 31, %v283_v17  ;;  %v509_v42 = vmov 0  }
  0xba   :  { %v192_v20 = vmul.u32 %v190_v9, %v165_v30  ;;  %v193_v22 = vmul.u32 %v189_v8, %v166_v31  ;;  %v191_v28 = vmul.u32 %v189_v8, %v165_v30  ;;  %v194_v29 = vmul.u32 %v190_v9, %v166_v31 }
  0xbb   :  { %v170_v15 = vmul.u32 %v168_v7, %v165_v30  ;;  %v171_v16 = vmul.u32 %v167_v6, %v166_v31  ;;  %v169_v18 = vmul.u32 %v167_v6, %v165_v30  ;;  %v172_v19 = vmul.u32 %v168_v7, %v166_v31 }
  0xbc   :  { %v195_v35 = vshll.u32 %v192_v20, 16  ;;  %v196_v37 = vshrl.u32 %v192_v20, 16  ;;  %v197_v38 = vshll.u32 %v193_v22, 16  ;;  %v198_v45 = vshrl.u32 %v193_v22, 16 }
  0xbd   :  { %v173_v25 = vshll.u32 %v170_v15, 16  ;;  %v174_v27 = vshrl.u32 %v170_v15, 16  ;;  %v175_v32 = vshll.u32 %v171_v16, 16  ;;  %v176_v33 = vshrl.u32 %v171_v16, 16 }
  0xbe   :  { %vm199_vm7 = vc.u32 %v191_v28, %v195_v35  ;;  %v201_v47 = vadd.s32 %v195_v35, %v191_v28  ;;  %v613_v30 = vsub.s32 32, %v285_v41  ;;  %v616_v52 = vshrl.u32 %v283_v17, 5 }
  0xbf   :  { %vm177_vm6 = vc.u32 %v169_v18, %v173_v25  ;;  %v179_v39 = vadd.s32 %v173_v25, %v169_v18  ;;  %v200_v50 = vsel %vm199_vm7, 1, %v509_v42  ;;  %v288_v56 = vshll.u32 %v503_v34, %v285_v41 }
  0xc0   :  { %v178_v44 = vsel %vm177_vm6, 1, %v509_v42  ;;  %v202_v51 = vadd.s32 %v200_v50, %v194_v29  ;;  %vm203_vm9 = vc.u32 %v201_v47, %v197_v38  ;;  %v619_v55 = vadd.s32 %v201_v47, %v197_v38 }
  0xc1   :  { %v180_v48 = vadd.s32 %v178_v44, %v172_v19  ;;  %vm181_vm8 = vc.u32 %v179_v39, %v175_v32  ;;  %v204_v54 = vsel %vm203_vm9, 1, %v509_v42  ;;  %v289_v58 = vshrl.u32 %v504_v36, %v613_v30 }
  0xc2   :  { %v182_v31 = vsel %vm181_vm8, 1, %v509_v42  ;;  %v206_v57 = vadd.s32 %v204_v54, %v202_v51  ;;  %v291_v59 = vshll.u32 %v504_v36, %v285_v41  ;;  %v292_v60 = vshrl.u32 %v505_v40, %v613_v30 }
  0xc3   :  { %v184_v53 = vadd.s32 %v182_v31, %v180_v48  ;;  %v294_v62 = vshll.u32 %v505_v40, %v285_v41  ;;  %v295_v63 = vshrl.u32 %v506_v43, %v613_v30  ;;  %v297_v0 = vshll.u32 %v506_v43, %v285_v41 }
  0xc4   :  { %v207_v1 = vadd.s32 %v206_v57, %v196_v37  ;;  %v631_v2 = vor.u32 %v289_v58, %v288_v56  ;;  %v633_v3 = vor.u32 %v292_v60, %v291_v59  ;;  %v298_v4 = vshrl.u32 %v507_v46, %v613_v30 }
  0xc5   :  { %v185_v61 = vadd.s32 %v184_v53, %v174_v27  ;;  %v296_v5 = vor.u32 %v295_v63, %v294_v62  ;;  %v300_v6 = vshll.u32 %v507_v46, %v285_v41  ;;  %v301_v40 = vshrl.u32 %v508_v49, %v613_v30 }
  0xc6   :  { %v208_v7 = vadd.s32 %v207_v1, %v198_v45  ;;  %v299_v8 = vor.u32 %v298_v4, %v297_v0  ;;  %vm303_vm11 = vcmp.lt.s32.totalorder %v616_v52, 1  ;;  %v645_v9 = vshll.u32 %v279_v10, 8 }
  0xc7   :  { %v637_v36 = vadd.s32 %v185_v61, %v176_v33  ;;  %v302_v43 = vor.u32 %v301_v40, %v300_v6  ;;  %v209_v15 = vmul.u32 %v587_v24, %v609_v11  ;;  %vm306_vm12 = vcmp.lt.s32.totalorder %v616_v52, 4 }
  0xc8   :  { %v212_v16 = vadd.s32 1, %v208_v7  ;;  %v311_v46 = vsel %vm303_vm11, %v631_v2, %v633_v3  ;;  %vm305_vm13 = vcmp.lt.s32.totalorder %v616_v52, 3  ;;  %v312_v49 = vsel %vm306_vm12, %v299_v8, 920167782 }
  0xc9   :  { %vm211_vm10 = vc.u32 %v637_v36, %v619_v55  ;;  %v315_v10 = vsel %vm303_vm11, %v633_v3, %v296_v5  ;;  %v316_v24 = vsel %vm306_vm12, %v302_v43, 1326507024  ;;  %vm304_vm14 = vcmp.lt.s32.totalorder %v616_v52, 2 }
  0xca   :  { %v213_v11 = vsel %vm211_vm10, %v212_v16, %v208_v7  ;;  %v313_v17 = vsel %vm305_vm13, %v296_v5, %v312_v49  ;;  %v317_v18 = vsel %vm305_vm13, %v299_v8, %v316_v24  ;;  %v320_v25 = vand.u32 65535, %v645_v9 }
  0xcb   :  { %v214_v19 = vadd.s32 %v213_v11, %v209_v15  ;;  %v314_v20 = vsel %vm304_vm14, %v311_v46, %v313_v17  ;;  %v318_v22 = vsel %vm304_vm14, %v315_v10, %v317_v18  ;;  %v321_v27 = vshrl.u32 %v645_v9, 16 }
  0xcc   :  { %v322_v28 = vand.u32 65535, %v318_v22  ;;  %v323_v29 = vshrl.u32 %v318_v22, 16  ;;  %v345_v32 = vshrl.u32 %v314_v20, 16  ;;  %v344_v35 = vand.u32 65535, %v314_v20 }
  0xcd   :  { %v215_v33 = vadd.s32 536870912, %v214_v19  ;;  %v308_v8 = vsel %vm306_vm12, %v296_v5, 2102212464  ;;  %v287_v15 = vshrl.u32 %v503_v34, %v613_v30  ;;  %v210_v34 = vadd.s32 %v619_v55, %v637_v36 }
  0xce   :  { %v325_v37 = vmul.u32 %v323_v29, %v320_v25  ;;  %v326_v39 = vmul.u32 %v322_v28, %v321_v27  ;;  %v347_v41 = vmul.u32 %v345_v32, %v320_v25  ;;  %v324_v44 = vmul.u32 %v322_v28, %v320_v25 }
  0xcf   :  { %v673_v38 = vshrl.u32 %v215_v33, 30  ;;  %v327_v48 = vmul.u32 %v323_v29, %v321_v27  ;;  %v346_v50 = vmul.u32 %v344_v35, %v320_v25  ;;  %v348_v54 = vmul.u32 %v344_v35, %v321_v27 }
  0xd0   :  { %v328_v45 = vshll.u32 %v325_v37, 16  ;;  %v350_v31 = vshll.u32 %v347_v41, 16  ;;  %v330_v51 = vshll.u32 %v326_v39, 16  ;;  %v329_v58 = vshrl.u32 %v325_v37, 16 }
  0xd1   :  { %v217_v47 = vshll.u32 %v673_v38, 30  ;;  %v349_v62 = vmul.u32 %v345_v32, %v321_v27  ;;  %v352_v0 = vshll.u32 %v348_v54, 16  ;;  %v331_v16 = vshrl.u32 %v326_v39, 16 }
  0xd2   :  { %vm332_vm15 = vc.u32 %v324_v44, %v328_v45  ;;  %v334_v53 = vadd.s32 %v328_v45, %v324_v44  ;;  %vm354_vm1 = vc.u32 %v346_v50, %v350_v31  ;;  %v356_v4 = vadd.s32 %v350_v31, %v346_v50 }
  0xd3   :  { %v218_v56 = vsub.s32 %v214_v19, %v217_v47  ;;  %v333_v57 = vsel %vm332_vm15, 1, %v509_v42  ;;  %v355_v1 = vsel %vm354_vm1, 1, %v509_v42  ;;  %v351_v10 = vshrl.u32 %v347_v41, 16 }
  0xd4   :  { %v335_v59 = vadd.s32 %v333_v57, %v327_v48  ;;  %vm336_vm0 = vc.u32 %v334_v53, %v330_v51  ;;  %v357_v40 = vadd.s32 %v355_v1, %v349_v62  ;;  %vm358_vm3 = vc.u32 %v356_v4, %v352_v0 }
  0xd5   :  { %vm219_vm2 = vcmp.lt.s32.totalorder %v218_v56, 0  ;;  %v220_v60 = vsub.s32 0, %v218_v56  ;;  %v337_v61 = vsel %vm336_vm0, 1, %v509_v42  ;;  %v359_v46 = vsel %vm358_vm3, 1, %v509_v42 }
  0xd6   :  { %v339_v63 = vadd.s32 %v337_v61, %v335_v59  ;;  %v361_v24 = vadd.s32 %v359_v46, %v357_v40  ;;  %v307_v11 = vsel %vm303_vm11, %v287_v15, %v631_v2  ;;  %v309_v17 = vsel %vm305_vm13, %v633_v3, %v308_v8 }
  0xd7   :  { %v221_v6 = vsel %vm219_vm2, %v220_v60, %v218_v56  ;;  %v353_v18 = vshrl.u32 %v348_v54, 16  ;;  %v360_v42 = vadd.s32 %v356_v4, %v352_v0  ;;  %v310_v25 = vsel %vm304_vm14, %v307_v11, %v309_v17 }
  0xd8   :  { %v222_v7 = vclz %v221_v6  ;;  %v340_v43 = vadd.s32 %v339_v63, %v329_v58  ;;  %v362_v19 = vadd.s32 %v361_v24, %v351_v10  ;;  %v364_v32 = vmul.u32 %v645_v9, %v310_v25 }
  0xd9   :  { %vm118_vm6 = vcmp.lt.s32.totalorder %v576_v13, 0  ;;  %vm701_vm7 = vcmp.le.f32.partialorder %v116_v14, 0.7853982  ;;  %v240_v51 = vsub.s32 4, %v673_v38  ;;  %vm259_vm13 = vweird.f32 %v576_v13 }
  0xda   :  { %v479_v49 = vadd.s32 4294967294, %v222_v7  ;;  %v341_v5 = vadd.s32 %v340_v43, %v331_v16  ;;  %v363_v27 = vadd.s32 %v362_v19, %v353_v18  ;;  %vm273_vm14 = vcmp.lt.s32.totalorder %v585_v23, 0 }
  0xdb   :  { %v241_v61 = vsel %vm118_vm6, %v240_v51, %v673_v38  ;;  %vm719_vm15 = vcmp.le.f32.partialorder %v271_v26, 0.7853982  ;;  %vm414_vm3 = vweird.f32 %v585_v23 }
  0xdc   :  { %vm480_vm4 = vcmp.lt.s32.totalorder %v479_v49, 0  ;;  %vm366_vm5 = vc.u32 %v341_v5, %v360_v42  ;;  %v367_v3 = vadd.s32 1, %v363_v27  ;;  %v243_v0 = vsel %vm701_vm7, 0, %v241_v61 }
  0xdd   :  { %v225_v30 = vsel %vm480_vm4, 0, %v479_v49  ;;  %v365_v8 = vadd.s32 %v360_v42, %v341_v5  ;;  %v260_v15 = vadd.s32 3, %v243_v0 }
  0xde   :  { %v226_v20 = vsub.s32 32, %v225_v30  ;;  %v230_v22 = vsub.s32 4294967266, %v225_v30  ;;  %v227_v2 = vshll.u32 %v218_v56, %v225_v30  ;;  %v368_v37 = vsel %vm366_vm5, %v367_v3, %v363_v27 }
  0xdf   :  { %v369_v39 = vadd.s32 %v368_v37, %v364_v32  ;;  %v261_v18 = vand.u32 3, %v260_v15 }
  0xe0   :  { %v228_v28 = vshrl.u32 %v210_v34, %v226_v20  ;;  %v231_v29 = vadd.s32 127, %v230_v22 }
  0xe1   :  { %v370_v36 = vadd.s32 536870912, %v369_v39  ;;  %vm263_vm10 = vcmp.eq.s32.totalorder %v261_v18, 0  ;;  %vm266_vm11 = vcmp.eq.s32.totalorder %v261_v18, 2  ;;  %vm262_vm12 = vcmp.lt.s32.totalorder %v261_v18, 2 }
  0xe2   :  { %v229_v33 = vor.u32 %v228_v28, %v227_v2  ;;  %v232_v35 = vshll.u32 %v231_v29, 23  ;;  %v502_v29 = vld [vmem:[%s742_s4] ss:$0 sm:$0xff] }
  0xe3   :  { %v695_v45 = vshrl.u32 %v370_v36, 30 }
  0xe4   :  { %v233_v55 = vor.u32 4788187, %v232_v35  ;;  %v236_v44 = vcvt.s32.f32 %v229_v33 }
  0xe5   :  { %v372_v47 = vshll.u32 %v695_v45, 30 }
  0xe6   :  { %v234_v41 = vand.u32 2147483647, %v233_v55 }
  0xe7   :  { %v373_v50 = vsub.s32 %v369_v39, %v372_v47 }
  0xe8   :  { %v237_v52 = vmul.f32 %v236_v44, %v234_v41 }
  0xe9   :  { %vm374_vm8 = vcmp.lt.s32.totalorder %v373_v50, 0  ;;  %v375_v54 = vsub.s32 0, %v373_v50 }
  0xea   :  { %v238_v48 = vxor.u32 2147483648, %v237_v52 }
  0xeb   :  { %v376_v57 = vsel %vm374_vm8, %v375_v54, %v373_v50 }
  0xec   :  { %v239_v31 = vsel %vm118_vm6, %v238_v48, %v237_v52  ;;  %v377_v60 = vclz %v376_v57 }
  0xed   :  { %v242_v53 = vsel %vm701_vm7, %v576_v13, %v239_v31  ;;  %v395_v13 = vsub.s32 4, %v695_v45 }
  0xee   :  { %v244_v56 = vmul.f32 %v242_v53, %v242_v53  ;;  %v482_v63 = vadd.s32 4294967294, %v377_v60 }
  0xef   :  { %v396_v26 = vsel %vm273_vm14, %v395_v13, %v695_v45 }
  0xf0   :  { %v245_v58 = vmul.f32 -0.001358992, %v244_v56  ;;  %v252_v59 = vmul.f32 -0.00019511016, %v244_v56  ;;  %vm483_vm9 = vcmp.lt.s32.totalorder %v482_v63, 0  ;;  %v398_v9 = vsel %vm719_vm15, 0, %v396_v26 }
  0xf1   :  { %v380_v6 = vsel %vm483_vm9, 0, %v482_v63 }
  0xf2   :  { %v246_v14 = vadd.f32 0.041655596, %v245_v58  ;;  %v253_v62 = vadd.f32 0.008332121, %v252_v59  ;;  %v381_v43 = vsub.s32 32, %v380_v6  ;;  %v385_v16 = vsub.s32 4294967266, %v380_v6 }
  0xf3   :  { %v382_v38 = vshll.u32 %v373_v50, %v380_v6 }
  0xf4   :  { %v247_v1 = vmul.f32 %v246_v14, %v244_v56  ;;  %v254_v4 = vmul.f32 %v253_v62, %v244_v56  ;;  %v383_v10 = vshrl.u32 %v365_v8, %v381_v43  ;;  %v386_v24 = vadd.s32 127, %v385_v16 }
  0xf6   :  { %v248_v40 = vadd.f32 -0.4999988, %v247_v1  ;;  %v255_v7 = vadd.f32 -0.16666654, %v254_v4  ;;  %v384_v19 = vor.u32 %v383_v10, %v382_v38  ;;  %v387_v34 = vshll.u32 %v386_v24, 23 }
  0xf8   :  { %v249_v46 = vmul.f32 %v248_v40, %v244_v56  ;;  %v256_v49 = vmul.f32 %v255_v7, %v244_v56  ;;  %v388_v22 = vor.u32 4788187, %v387_v34  ;;  %v391_v42 = vcvt.s32.f32 %v384_v19 }
  0xf9   :  { %v415_v56 = vadd.s32 3, %v398_v9 }
  0xfa   :  { %v250_v11 = vadd.f32 1.0, %v249_v46  ;;  %v257_v17 = vadd.f32 1.0, %v256_v49  ;;  %v389_v5 = vand.u32 2147483647, %v388_v22 }
  0xfb   :  { %v416_v60 = vand.u32 3, %v415_v56 }
  0xfc   :  { %v258_v30 = vmul.f32 %v257_v17, %v242_v53  ;;  %v267_v20 = vxor.u32 2147483648, %v250_v11  ;;  %v392_v3 = vmul.f32 %v391_v42, %v389_v5 }
  0xfd   :  { %vm418_vm0 = vcmp.eq.s32.totalorder %v416_v60, 0  ;;  %vm421_vm1 = vcmp.eq.s32.totalorder %v416_v60, 2  ;;  %vm417_vm2 = vcmp.lt.s32.totalorder %v416_v60, 2 }
  0xfe   :  { %v264_v25 = vxor.u32 2147483648, %v258_v30  ;;  %v268_v2 = vsel %vm266_vm11, %v267_v20, %v258_v30  ;;  %v393_v35 = vxor.u32 2147483648, %v392_v3 }
 0x100   :  { %v265_v27 = vsel %vm263_vm10, %v250_v11, %v264_v25  ;;  %v394_v55 = vsel %vm273_vm14, %v393_v35, %v392_v3 }
 0x101   :  { %v269_v28 = vsel %vm262_vm12, %v265_v27, %v268_v2  ;;  %v397_v36 = vsel %vm719_vm15, %v585_v23, %v394_v55 }
 0x102   :  { %v270_v32 = vsel %vm259_vm13, nan, %v269_v28  ;;  %v399_v44 = vmul.f32 %v397_v36, %v397_v36 }
 0x103   :  { %v427_v33 = vmul.f32 %v270_v32, %v270_v32 }
 0x104   :  { %v400_v52 = vmul.f32 -0.001358992, %v399_v44  ;;  %v407_v47 = vmul.f32 -0.00019511016, %v399_v44 }
 0x105   :  { %v432_v37 = vmul.f32 %v502_v29, %v427_v33 }
 0x106   :  { %v401_v48 = vadd.f32 0.041655596, %v400_v52  ;;  %v408_v50 = vadd.f32 0.008332121, %v407_v47 }
 0x107   :  { %v434_v41 = vadd.f32 %v432_v37, %v573_v12 }
 0x108   :  { %v402_v31 = vmul.f32 %v401_v48, %v399_v44  ;;  %v409_v51 = vmul.f32 %v408_v50, %v399_v44 }
 0x109   :  { %436 = vst [vmem:[%s744_s5] sm:$0xff] %v434_v41 }
 0x10a   :  { %v403_v53 = vadd.f32 -0.4999988, %v402_v31  ;;  %v410_v54 = vadd.f32 -0.16666654, %v409_v51 }
 0x10c   :  { %v404_v12 = vmul.f32 %v403_v53, %v399_v44  ;;  %v411_v57 = vmul.f32 %v410_v54, %v399_v44 }
 0x10e   :  { %v405_v58 = vadd.f32 1.0, %v404_v12  ;;  %v412_v59 = vadd.f32 1.0, %v411_v57 }
 0x110   :  { %v413_v61 = vmul.f32 %v412_v59, %v397_v36  ;;  %v422_v14 = vxor.u32 2147483648, %v405_v58 }
 0x112   :  { %v419_v62 = vxor.u32 2147483648, %v413_v61  ;;  %v423_v63 = vsel %vm421_vm1, %v422_v14, %v413_v61 }
 0x114   :  { %v420_v45 = vsel %vm418_vm0, %v405_v58, %v419_v62 }
 0x115   :  { %v424_v0 = vsel %vm417_vm2, %v420_v45, %v423_v63 }
 0x116   :  { %v425_v1 = vsel %vm414_vm3, nan, %v424_v0 }
 0x117   :  { %v428_v4 = vmul.f32 %v425_v1, %v425_v1 }
 0x119   :  { %v433_v6 = vmul.f32 %v502_v29, %v428_v4 }
 0x11b   :  { %v435_v40 = vadd.f32 %v433_v6, %v582_v21 }
 0x11d   :  { %437 = vst [vmem:[%s744_s5 + $0x8] sm:$0xff] %v435_v40 }

</bundles_post_ra>
